<compile_context>
chip_gen: v5e
topology: v5e:2x2
jax: 0.10.0
libtpu: 0.0.40
codegen_flags: <defaults>
</compile_context>

<pallas_src>
import functools

import jax
import jax.numpy as jnp
from jax import lax
from jax.experimental import pallas as pl
from jax.experimental.pallas import tpu as pltpu

POOL = 4  # AvgPool1d(4): kernel_size = stride = 4, no padding


def _round_up(a, b):
    return (a + b - 1) // b * b


def _cdiv(a, b):
    return (a + b - 1) // b


def _query_tpu():
    """Best-effort generation detection: (VMEM capacity bytes, is_v5e)."""
    vmem = 64 * 1024 * 1024  # conservative default (v7x-sized VMEM)
    kind = ""
    try:
        kind = jax.devices()[0].device_kind.lower()
    except Exception:
        pass
    try:
        vmem = int(pltpu.get_tpu_info().vmem_capacity_bytes)
    except Exception:
        pass
    is_v5e = ("v5e" in kind) or ("v5 lite" in kind) or ("v5lite" in kind)
    return vmem, is_v5e


_VMEM_BYTES, _IS_V5E = _query_tpu()


def _avgpool_kernel(p_ref, x_ref, o_ref, *, cw, n_chunks, l_used,
                    needs_col_mask, single_col_block, exact_f32):
    cwi = cw * POOL
    tci = x_ref.shape[1]
    j = pl.program_id(1)

    def chunk(c, mask_cols):
        if isinstance(c, int):
            in_start, out_start = c * cwi, c * cw
        else:
            in_start = pl.multiple_of(c * cwi, cwi)
            out_start = pl.multiple_of(c * cw, cw)
        xc = x_ref[:, pl.ds(in_start, cwi)].astype(jnp.float32)
        if mask_cols:
            # Edge column block: zero columns past the pooled input length so
            # undefined block padding (possibly NaN/Inf) cannot contaminate the
            # in-bounds output columns of the same matmul chunk (0 * NaN = NaN).
            col = j * tci + c * cwi + lax.broadcasted_iota(jnp.int32, (1, cwi), 1)
            xc = jnp.where(col < l_used, xc, 0.0)
        if exact_f32:
            # Exact 3-term bf16 split: xc == hi + mid + lo (to ~1 ulp), so three
            # bf16 MXU passes with f32 accumulation reproduce the f32 average.
            hi = xc.astype(jnp.bfloat16)
            r1 = xc - hi.astype(jnp.float32)
            mid = r1.astype(jnp.bfloat16)
            lo = (r1 - mid.astype(jnp.float32)).astype(jnp.bfloat16)
            acc = jnp.dot(hi, p_ref[...], preferred_element_type=jnp.float32)
            acc = acc + jnp.dot(mid, p_ref[...], preferred_element_type=jnp.float32)
            acc = acc + jnp.dot(lo, p_ref[...], preferred_element_type=jnp.float32)
        else:
            # bf16 (and other sub-f32) inputs: a single MXU pass is exact enough.
            acc = jnp.dot(xc.astype(jnp.bfloat16), p_ref[...],
                          preferred_element_type=jnp.float32)
        o_ref[:, pl.ds(out_start, cw)] = acc.astype(o_ref.dtype)

    def run(mask_cols):
        if n_chunks == 1:
            chunk(0, mask_cols)
        else:
            def body(c, carry):
                chunk(c, mask_cols)
                return carry
            lax.fori_loop(0, n_chunks, body, 0, unroll=2)

    if not needs_col_mask:
        run(False)
    elif single_col_block:
        run(True)
    else:
        last = pl.num_programs(1) - 1

        @pl.when(j == last)
        def _():
            run(True)

        @pl.when(j != last)
        def _():
            run(False)


@functools.partial(jax.jit, static_argnames=("row_tile", "col_tile"))
def spherical_down(x, *, row_tile=None, col_tile=None):
    """Equivalent of nn.AvgPool1d(4) on x of shape (N, C, L)."""
    N, C, L = x.shape
    Lout = L // POOL                 # PyTorch AvgPool1d floors the output length
    assert Lout > 0, "length must be at least 4"
    L_used = Lout * POOL
    R = N * C

    x2 = x.reshape(R, L)             # free reshape; no pad / slice HBM copies

    small_vmem = _VMEM_BYTES <= 64 * 1024 * 1024       # v7x-like VMEM
    if row_tile is None:
        row_tile = 512
    if col_tile is None:
        col_tile = 1024 if small_vmem else 2048        # ~20 MiB vs ~40 MiB blocks

    TR = min(row_tile, _round_up(R, 8))                # sublane multiple of 8
    TCO = min(col_tile, _round_up(Lout, 128))          # lane multiple of 128

    isz = x.dtype.itemsize

    def est_bytes(tr, tco):
        blocks = 2 * tr * tco * POOL * isz + 2 * tr * tco * isz   # dbl-buffered in/out
        scratch = 16 * tr * min(tco, 256) * POOL + (1 << 20)      # chunk temps + pool mat
        return blocks + scratch

    vmem_budget = min(96 * 1024 * 1024, (_VMEM_BYTES * 3) // 4)
    while est_bytes(TR, TCO) > vmem_budget:
        if TCO > 128:
            TCO = max(128, _round_up(TCO // 2, 128))
        elif TR > 8:
            TR = max(8, _round_up(TR // 2, 8))
        else:
            break

    # Guarantee >= 2 grid steps along a parallel axis when cheaply possible so
    # both TensorCores get work on multi-TC chips (v7x); ~free on v5e/v6e.
    if _cdiv(R, TR) * _cdiv(Lout, TCO) < 2:
        half_tr = _round_up(max(TR // 2, 8), 8)
        half_tco = _round_up(max(TCO // 2, 128), 128)
        if half_tr < TR and _cdiv(R, half_tr) >= 2:
            TR = half_tr
        elif half_tco < TCO and _cdiv(Lout, half_tco) >= 2:
            TCO = half_tco

    TCI = TCO * POOL

    # Per-chunk MXU width: 256 fills the 256-wide v6e/v7x MXU; 128 on v5e
    # (4x128x128 MXU) or when the column tile is too narrow.
    cw = 256 if (not _IS_V5E and TCO % 256 == 0) else 128
    cwi = cw * POOL
    n_chunks = TCO // cw

    grid_i = _cdiv(R, TR)
    grid_j = _cdiv(Lout, TCO)
    needs_col_mask = (Lout % TCO) != 0

    # Block-diagonal pooling matrix (cwi -> cw): p[i, j] = 1/4 iff i // 4 == j.
    # 0.25 is exact in bf16, so the MXU products are exact.
    rows = jnp.arange(cwi)[:, None] // POOL
    cols = jnp.arange(cw)[None, :]
    pool_mat = jnp.where(rows == cols, 1.0 / POOL, 0.0).astype(jnp.bfloat16)

    kernel = functools.partial(
        _avgpool_kernel,
        cw=cw,
        n_chunks=n_chunks,
        l_used=L_used,
        needs_col_mask=needs_col_mask,
        single_col_block=(grid_j == 1),
        exact_f32=(x2.dtype == jnp.float32),
    )

    out = pl.pallas_call(
        kernel,
        out_shape=jax.ShapeDtypeStruct((R, Lout), x.dtype),
        grid=(grid_i, grid_j),
        in_specs=[
            pl.BlockSpec((cwi, cw), lambda i, j: (0, 0)),  # pooling matrix (fetched once)
            pl.BlockSpec((TR, TCI), lambda i, j: (i, j)),  # input tile
        ],
        out_specs=pl.BlockSpec((TR, TCO), lambda i, j: (i, j)),
        compiler_params=pltpu.CompilerParams(
            dimension_semantics=("parallel", "parallel"),  # megacore on v7x
            vmem_limit_bytes=int(vmem_budget),
        ),
    )(pool_mat, x2)

    return out.reshape(N, C, Lout)


if __name__ == "__main__":
    key = jax.random.PRNGKey(0)

    # Small shapes consistent with the module: (batch, channels, length).
    N, C, L = 2, 4, 16
    x = jax.random.normal(key, (N, C, L), dtype=jnp.float32)
    y = jax.block_until_ready(spherical_down(x))
    y_ref = x.reshape(N, C, L // POOL, POOL).mean(axis=-1)
    assert y.shape == (N, C, L // POOL)
    assert jnp.allclose(y, y_ref, atol=1e-5, rtol=1e-5)

    # Multi-row-block path: exercises row tiling and the >=2-step parallel grid.
    xb = jax.random.normal(jax.random.PRNGKey(0), (2, 160, 1024), dtype=jnp.float32)
    yb = jax.block_until_ready(spherical_down(xb))
    yb_ref = xb.reshape(2, 160, 256, POOL).mean(axis=-1)
    assert jnp.allclose(yb, yb_ref, atol=1e-5, rtol=1e-5)

    # Multi-chunk path: exercises the in-kernel fori_loop over 128/256-wide chunks.
    xm = jax.random.normal(jax.random.PRNGKey(3), (2, 8, 4096), dtype=jnp.float32)
    ym = jax.block_until_ready(spherical_down(xm))
    ym_ref = xm.reshape(2, 8, 1024, POOL).mean(axis=-1)
    assert jnp.allclose(ym, ym_ref, atol=1e-5, rtol=1e-5)

    # Ragged shape: L % 4 != 0 and Lout not a multiple of the column tile ->
    # exercises in-kernel edge-column masking and row padding (floor semantics).
    xr = jax.random.normal(jax.random.PRNGKey(1), (2, 3, 1030), dtype=jnp.float32)
    yr = jax.block_until_ready(spherical_down(xr))
    Lo = 1030 // POOL
    yr_ref = xr[:, :, :Lo * POOL].reshape(2, 3, Lo, POOL).mean(axis=-1)
    assert yr.shape == (2, 3, Lo)
    assert jnp.allclose(yr, yr_ref, atol=1e-5, rtol=1e-5)

    # bf16 input -> dtype-gated single-pass MXU path.
    xd = jax.random.normal(jax.random.PRNGKey(2), (2, 8, 512), dtype=jnp.bfloat16)
    yd = jax.block_until_ready(spherical_down(xd))
    yd_ref = xd.astype(jnp.float32).reshape(2, 8, 128, POOL).mean(axis=-1).astype(jnp.bfloat16)
    assert jnp.allclose(yd.astype(jnp.float32), yd_ref.astype(jnp.float32),
                        atol=2e-2, rtol=2e-2)

    print("KERNEL_OK")
</pallas_src>

<mosaic_0001>
module attributes {stable_mosaic.version = 11 : i64} {
  func.func @_avgpool_kernel(%arg0: i32, %arg1: i32, %arg2: memref<512x128xbf16, #tpu.memory_space<vmem>>, %arg3: memref<8x512xf32, #tpu.memory_space<vmem>>, %arg4: memref<8x128xf32, #tpu.memory_space<vmem>>) attributes {dimension_semantics = [#tpu.dimension_semantics<parallel>, #tpu.dimension_semantics<parallel>], iteration_bounds = array<i64: 1, 1>, scalar_prefetch = 0 : i64, scratch_operands = 0 : i64, tpu.core_type = #tpu.core_type<tc>, window_params = [{pipeline_mode = #tpu.pipeline_mode<synchronous>, transform_indices = @transform_0, window_bounds = array<i64: 512, 128>}, {transform_indices = @transform_1, window_bounds = array<i64: 8, 512>}, {transform_indices = @transform_2, window_bounds = array<i64: 8, 128>}]} {
    %c0 = arith.constant 0 : index
    %c0_0 = arith.constant 0 : index
    %0 = vector.load %arg3[%c0, %c0_0] : memref<8x512xf32, #tpu.memory_space<vmem>>, vector<8x512xf32>
    %c512_i32 = arith.constant 512 : i32
    %1 = arith.muli %arg1, %c512_i32 : i32
    %c0_i32 = arith.constant 0 : i32
    %2 = arith.addi %1, %c0_i32 : i32
    %3 = tpu.iota {dimensions = array<i32: 1>} : vector<1x512xi32>
    %4 = vector.broadcast %2 : i32 to vector<1x512xi32>
    %5 = arith.addi %4, %3 : vector<1x512xi32>
    %c16_i32 = arith.constant 16 : i32
    %6 = vector.broadcast %c16_i32 : i32 to vector<1x512xi32>
    %7 = arith.cmpi slt, %5, %6 : vector<1x512xi32>
    %cst = arith.constant 0.000000e+00 : f32
    %8 = vector.shape_cast %7 : vector<1x512xi1> to vector<1x512xi1>
    %9 = vector.broadcast %8 : vector<1x512xi1> to vector<8x512xi1>
    %10 = vector.broadcast %cst : f32 to vector<8x512xf32>
    %11 = arith.select %9, %0, %10 : vector<8x512xi1>, vector<8x512xf32>
    %12 = arith.truncf %11 : vector<8x512xf32> to vector<8x512xbf16>
    %13 = arith.extf %12 : vector<8x512xbf16> to vector<8x512xf32>
    %14 = arith.subf %11, %13 : vector<8x512xf32>
    %15 = arith.truncf %14 : vector<8x512xf32> to vector<8x512xbf16>
    %16 = arith.extf %15 : vector<8x512xbf16> to vector<8x512xf32>
    %17 = arith.subf %14, %16 : vector<8x512xf32>
    %18 = arith.truncf %17 : vector<8x512xf32> to vector<8x512xbf16>
    %c0_1 = arith.constant 0 : index
    %c0_2 = arith.constant 0 : index
    %19 = vector.load %arg2[%c0_1, %c0_2] : memref<512x128xbf16, #tpu.memory_space<vmem>>, vector<512x128xbf16>
    %cst_3 = arith.constant dense<0.000000e+00> : vector<8x128xf32>
    %20 = tpu.matmul %12, %19, %cst_3 {dimension_numbers = #tpu.dot_dimension_numbers<[1], [0], [0], [1], [0, 0, 1, 1], [], []>} : vector<8x512xbf16>, vector<512x128xbf16>, vector<8x128xf32> -> vector<8x128xf32>
    %c0_4 = arith.constant 0 : index
    %c0_5 = arith.constant 0 : index
    %21 = vector.load %arg2[%c0_4, %c0_5] : memref<512x128xbf16, #tpu.memory_space<vmem>>, vector<512x128xbf16>
    %cst_6 = arith.constant dense<0.000000e+00> : vector<8x128xf32>
    %22 = tpu.matmul %15, %21, %cst_6 {dimension_numbers = #tpu.dot_dimension_numbers<[1], [0], [0], [1], [0, 0, 1, 1], [], []>} : vector<8x512xbf16>, vector<512x128xbf16>, vector<8x128xf32> -> vector<8x128xf32>
    %23 = arith.addf %20, %22 : vector<8x128xf32>
    %c0_7 = arith.constant 0 : index
    %c0_8 = arith.constant 0 : index
    %24 = vector.load %arg2[%c0_7, %c0_8] : memref<512x128xbf16, #tpu.memory_space<vmem>>, vector<512x128xbf16>
    %cst_9 = arith.constant dense<0.000000e+00> : vector<8x128xf32>
    %25 = tpu.matmul %18, %24, %cst_9 {dimension_numbers = #tpu.dot_dimension_numbers<[1], [0], [0], [1], [0, 0, 1, 1], [], []>} : vector<8x512xbf16>, vector<512x128xbf16>, vector<8x128xf32> -> vector<8x128xf32>
    %26 = arith.addf %23, %25 : vector<8x128xf32>
    %c0_10 = arith.constant 0 : index
    %c0_11 = arith.constant 0 : index
    %27 = vector.load %arg4[%c0_10, %c0_11] : memref<8x128xf32, #tpu.memory_space<vmem>>, vector<8x128xf32>
    tpu.vector_store %arg4[%c0_10, %c0_11], %26 {strides = array<i32>} : memref<8x128xf32, #tpu.memory_space<vmem>>, vector<8x128xf32>,
    return
  }
  func.func @transform_0(%arg0: i32, %arg1: i32) -> (i32, i32) {
    %c0_i32 = arith.constant 0 : i32
    %c0_i32_0 = arith.constant 0 : i32
    %c0_i32_1 = arith.constant 0 : i32
    return %c0_i32, %c0_i32_0 : i32, i32
  }
  func.func @transform_1(%arg0: i32, %arg1: i32) -> (i32, i32) {
    %c0_i32 = arith.constant 0 : i32
    return %arg0, %arg1 : i32, i32
  }
  func.func @transform_2(%arg0: i32, %arg1: i32) -> (i32, i32) {
    %c0_i32 = arith.constant 0 : i32
    return %arg0, %arg1 : i32, i32
  }
}

</mosaic_0001>

<bundles_post_ra>
// kernel: spherical_down.1
= control target key start
LH: loop header
LB: loop body
LE: loop exit
PB: predicated region body
PF: predicated region fallthrough
CT: control target
= control target key end

     0   :  { %v17_v8 = vlaneseq  ;;  %s1031_s0 = inlined_call_operand.vmem [shape: bf16[512,128], index: 0, kind: input, shape index: {}]   ;;  %s1032_s1 = inlined_call_operand.vmem [shape: f32[8,16], index: 1, kind: input, shape index: {}]   ;;  %s1033_s2 = inlined_call_operand.hbm [shape: f32[8,4], index: 2, kind: output, shape index: {}]  }
   0x1   :  { %v733_v0 = vld [vmem:[%s1031_s0 + $0x38] sm:$0xff]  ;;  %v755_v4 = vld [vmem:[%s1031_s0 + $0x30] sm:$0xff]  ;;  %v779_v10 = vld [vmem:[%s1031_s0 + $0x28] sm:$0xff] }
   0x2   :  { %v738_v1 = vld [vmem:[%s1031_s0 + $0x78] sm:$0xff]  ;;  %337 = vmatpush.bf16.msra.mxu0 %v733_v0  ;;  %v760_v5 = vld [vmem:[%s1031_s0 + $0x70] sm:$0xff]  ;;  %v18_v9 = vand.u32 127, %v17_v8  ;;  %v784_v11 = vld [vmem:[%s1031_s0 + $0x68] sm:$0xff] }
   0x3   :  { %v743_v2 = vld [vmem:[%s1031_s0 + $0xb8] sm:$0xff]  ;;  %350 = vmatpush.bf16.msra.mxu1 %v738_v1  ;;  %v767_v6 = vld [vmem:[%s1031_s0 + $0xb0] sm:$0xff]  ;;  %v791_v12 = vld [vmem:[%s1031_s0 + $0xa8] sm:$0xff] }
   0x4   :  { %v748_v3 = vld [vmem:[%s1031_s0 + $0xf8] sm:$0xff]  ;;  %363 = vmatpush.bf16.msra.mxu2 %v743_v2  ;;  %v772_v7 = vld [vmem:[%s1031_s0 + $0xf0] sm:$0xff]  ;;  %v796_v13 = vld [vmem:[%s1031_s0 + $0xe8] sm:$0xff]  ;;  %vm27_vm0 = vcmp.lt.s32.totalorder %v18_v9, 16 }
   0x5   :  { %376 = vmatpush.bf16.msra.mxu3 %v748_v3  ;;  %v803_v14 = vld [vmem:[%s1031_s0 + $0x20] sm:$0xff] }
   0x6   :  { %338 = vmatpush.bf16.msra.mxu0 %v755_v4  ;;  %v808_v15 = vld [vmem:[%s1031_s0 + $0x60] sm:$0xff] }
   0x7   :  { %351 = vmatpush.bf16.msra.mxu1 %v760_v5  ;;  %v12_v16 = vld [vmem:[%s1032_s1] sm:$0xff] }
   0x8   :  { %364 = vmatpush.bf16.msra.mxu2 %v767_v6  ;;  %v818_v17 = vld [vmem:[%s1031_s0 + $0xa0] sm:$0xff]  ;;  %v39_v19 = vsel %vm27_vm0, %v12_v16, 0.0 }
   0x9   :  { %377 = vmatpush.bf16.msra.mxu3 %v772_v7  ;;  %v823_v18 = vld [vmem:[%s1031_s0 + $0xe0] sm:$0xff] }
   0xa   :  { %339 = vmatpush.bf16.msra.mxu0 %v779_v10 }
   0xb   :  { %352 = vmatpush.bf16.msra.mxu1 %v784_v11 }
   0xc   :  { %365 = vmatpush.bf16.msra.mxu2 %v791_v12 }
   0xd   :  { %378 = vmatpush.bf16.msra.mxu3 %v796_v13 }
   0xe   :  { %7 = vsyncpa [#allocation3], 0  ;;  %v825_v20 = vpack.c.bf16 0.0, %v39_v19  ;;  %340 = vmatpush.bf16.msra.mxu0 %v803_v14  ;;  %v832_v21 = vld [vmem:[%s1031_s0 + $0x18] sm:$0xff]  ;;  %v713_v23 = vmov 0.0|0.0   ;;  %v863_v29 = vld [vmem:[%s1031_s0 + $0x10] sm:$0xff] }
   0xf   :  { %353 = vmatpush.bf16.msra.mxu1 %v808_v15  ;;  %v837_v22 = vld [vmem:[%s1031_s0 + $0x58] sm:$0xff]  ;;  %v840_v24 = vunpack.c.l.bf16 %v713_v23  ;;  %v843_v25 = vunpack.c.h.bf16 %v713_v23  ;;  %v868_v30 = vld [vmem:[%s1031_s0 + $0x50] sm:$0xff]  ;;  %v891_v36 = vld [vmem:[%s1031_s0 + $0x8] sm:$0xff]  ;;  %v393_v54 = vunpack.c.l.b16 %v713_v23  ;;  %v394_v56 = vunpack.c.h.b16 %v713_v23  ;;  %s516_s20 = sshll.u32 %s1033_s2, 4  ;;  %s517_s20 = int_to_ptr.hbm [resolvable:$true] %s516_s20 }
  0x10   :  { %v45_v26 = vunpack.c.l.bf16 %v825_v20  ;;  %366 = vmatpush.bf16.msra.mxu2 %v818_v17  ;;  %v851_v27 = vld [vmem:[%s1031_s0 + $0x98] sm:$0xff]  ;;  %v879_v34 = vld [vmem:[%s1031_s0 + $0x90] sm:$0xff]  ;;  %v896_v37 = vld [vmem:[%s1031_s0 + $0x48] sm:$0xff]  ;;  %v391_v55 = vunpack.c.l.b16 %v825_v20  ;;  %v392_v57 = vunpack.c.h.b16 %v825_v20 }
  0x11   :  { %379 = vmatpush.bf16.msra.mxu3 %v823_v18  ;;  %v856_v28 = vld [vmem:[%s1031_s0 + $0xd8] sm:$0xff]  ;;  %v51_v31 = vsub.f32 0.0, %v840_v24  ;;  %v52_v32 = vsub.f32 0.0, %v843_v25  ;;  %v884_v35 = vld [vmem:[%s1031_s0 + $0xd0] sm:$0xff]  ;;  %v912_v40 = vld [vmem:[%s1031_s0 + $0x88] sm:$0xff]  ;;  %v397_v58 = vpack.c.b16 %v393_v54, %v393_v54  ;;  %v398_v60 = vpack.c.b16 %v394_v56, %v394_v56 }
  0x12   :  { %341 = vmatpush.bf16.msra.mxu0 %v832_v21  ;;  %v872_v33 = vsub.f32 %v39_v19, %v45_v26  ;;  %v917_v41 = vld [vmem:[%s1031_s0 + $0xc8] sm:$0xff]  ;;  %v924_v42 = vld [vmem:[%s1031_s0] sm:$0xff]  ;;  %v395_v59 = vpack.c.b16 %v391_v55, %v391_v55  ;;  %v396_v61 = vpack.c.b16 %v392_v57, %v392_v57 }
  0x13   :  { %354 = vmatpush.bf16.msra.mxu1 %v837_v22  ;;  %v902_v38 = vpack.c.bf16 %v52_v32, %v51_v31  ;;  %v929_v43 = vld [vmem:[%s1031_s0 + $0x40] sm:$0xff] }
  0x14   :  { %367 = vmatpush.bf16.msra.mxu2 %v851_v27  ;;  %v905_v39 = vpack.c.bf16 0.0, %v872_v33  ;;  %v938_v46 = vld [vmem:[%s1031_s0 + $0x80] sm:$0xff] }
  0x15   :  { %380 = vmatpush.bf16.msra.mxu3 %v856_v28  ;;  %v135_v44 = vunpack.c.l.b16 %v902_v38  ;;  %v943_v47 = vld [vmem:[%s1031_s0 + $0xc0] sm:$0xff]  ;;  %v136_v48 = vunpack.c.h.b16 %v902_v38  ;;  %v57_v63 = vunpack.c.l.bf16 %v902_v38  ;;  %s714_s0 = smov [#allocation2]  }
  0x16   :  { %342 = vmatpush.bf16.msra.mxu0 %v863_v29  ;;  %v133_v45 = vunpack.c.l.b16 %v905_v39  ;;  %v134_v49 = vunpack.c.h.b16 %v905_v39  ;;  %v55_v62 = vunpack.c.l.bf16 %v905_v39  ;;  %s514_s17 = sshll.u32 %s714_s0, 4  ;;  %s515_s17 = int_to_ptr.vmem [resolvable:$true] %s514_s17 }
  0x17   :  { %355 = vmatpush.bf16.msra.mxu1 %v868_v30  ;;  %v139_v50 = vpack.c.b16 %v135_v44, %v135_v44  ;;  %v140_v52 = vpack.c.b16 %v136_v48, %v136_v48 }
  0x18   :  { %368 = vmatpush.bf16.msra.mxu2 %v879_v34  ;;  %v137_v51 = vpack.c.b16 %v133_v45, %v133_v45  ;;  %v138_v53 = vpack.c.b16 %v134_v49, %v134_v49 }
  0x19   :  { %381 = vmatpush.bf16.msra.mxu3 %v884_v35 }
  0x1a   :  { %343 = vmatpush.bf16.msra.mxu0 %v891_v36 }
  0x1b   :  { %356 = vmatpush.bf16.msra.mxu1 %v896_v37 }
  0x1c   :  { %369 = vmatpush.bf16.msra.mxu2 %v912_v40 }
  0x1d   :  { %382 = vmatpush.bf16.msra.mxu3 %v917_v41 }
  0x1e   :  { %344 = vmatpush.bf16.msra.mxu0 %v924_v42 }
  0x1f   :  { %357 = vmatpush.bf16.msra.mxu1 %v929_v43 }
  0x20   :  { %370 = vmatpush.bf16.msra.mxu2 %v938_v46 }
  0x21   :  { %383 = vmatpush.bf16.msra.mxu3 %v943_v47  ;;  %345 = vmatmul.bf16.vlgmr.msra.gmra.mxu0 %v137_v51 }
  0x22   :  { %403 = vmatpush.bf16.msrb.mxu0 %v733_v0  ;;  %358 = vmatmul.bf16.vlgmr.msra.gmra.mxu1 %v138_v53 }
  0x23   :  { %416 = vmatpush.bf16.msrb.mxu1 %v738_v1  ;;  %371 = vmatmul.bf16.vlgmr.msra.gmra.mxu2 %v139_v50 }
  0x24   :  { %429 = vmatpush.bf16.msrb.mxu2 %v743_v2  ;;  %384 = vmatmul.bf16.vlgmr.msra.gmra.mxu3 %v140_v52 }
  0x25   :  { %442 = vmatpush.bf16.msrb.mxu3 %v748_v3 }
  0x26   :  { %404 = vmatpush.bf16.msrb.mxu0 %v755_v4 }
  0x27   :  { %417 = vmatpush.bf16.msrb.mxu1 %v760_v5 }
  0x28   :  { %430 = vmatpush.bf16.msrb.mxu2 %v767_v6 }
  0x29   :  { %443 = vmatpush.bf16.msrb.mxu3 %v772_v7 }
  0x2a   :  { %405 = vmatpush.bf16.msrb.mxu0 %v779_v10 }
  0x2b   :  { %418 = vmatpush.bf16.msrb.mxu1 %v784_v11 }
  0x2c   :  { %431 = vmatpush.bf16.msrb.mxu2 %v791_v12 }
  0x2d   :  { %444 = vmatpush.bf16.msrb.mxu3 %v796_v13 }
  0x2e   :  { %406 = vmatpush.bf16.msrb.mxu0 %v803_v14 }
  0x2f   :  { %419 = vmatpush.bf16.msrb.mxu1 %v808_v15 }
  0x30   :  { %432 = vmatpush.bf16.msrb.mxu2 %v818_v17 }
  0x31   :  { %445 = vmatpush.bf16.msrb.mxu3 %v823_v18 }
  0x32   :  { %407 = vmatpush.bf16.msrb.mxu0 %v832_v21 }
  0x33   :  { %420 = vmatpush.bf16.msrb.mxu1 %v837_v22 }
  0x34   :  { %433 = vmatpush.bf16.msrb.mxu2 %v851_v27 }
  0x35   :  { %446 = vmatpush.bf16.msrb.mxu3 %v856_v28 }
  0x36   :  { %408 = vmatpush.bf16.msrb.mxu0 %v863_v29 }
  0x37   :  { %421 = vmatpush.bf16.msrb.mxu1 %v868_v30 }
  0x38   :  { %434 = vmatpush.bf16.msrb.mxu2 %v879_v34 }
  0x39   :  { %447 = vmatpush.bf16.msrb.mxu3 %v884_v35 }
  0x3a   :  { %409 = vmatpush.bf16.msrb.mxu0 %v891_v36 }
  0x3b   :  { %422 = vmatpush.bf16.msrb.mxu1 %v896_v37 }
  0x3c   :  { %435 = vmatpush.bf16.msrb.mxu2 %v912_v40 }
  0x3d   :  { %448 = vmatpush.bf16.msrb.mxu3 %v917_v41 }
  0x3e   :  { %410 = vmatpush.bf16.msrb.mxu0 %v924_v42 }
  0x3f   :  { %423 = vmatpush.bf16.msrb.mxu1 %v929_v43 }
  0x40   :  { %436 = vmatpush.bf16.msrb.mxu2 %v938_v46 }
  0x41   :  { %449 = vmatpush.bf16.msrb.mxu3 %v943_v47  ;;  %411 = vmatmul.bf16.vlgmr.msrb.gmra.mxu0 %v395_v59 }
  0x42   :  { %455 = vmatpush.bf16.msra.mxu0 %v733_v0  ;;  %424 = vmatmul.bf16.vlgmr.msrb.gmra.mxu1 %v396_v61  ;;  %v58_v0 = vunpack.c.h.bf16 %v902_v38 }
  0x43   :  { %468 = vmatpush.bf16.msra.mxu1 %v738_v1  ;;  %437 = vmatmul.bf16.vlgmr.msrb.gmra.mxu2 %v397_v58  ;;  %v59_v1 = vsub.f32 %v872_v33, %v55_v62 }
  0x44   :  { %481 = vmatpush.bf16.msra.mxu2 %v743_v2  ;;  %450 = vmatmul.bf16.vlgmr.msrb.gmra.mxu3 %v398_v60  ;;  %v61_v2 = vsub.f32 %v51_v31, %v57_v63 }
  0x45   :  { %494 = vmatpush.bf16.msra.mxu3 %v748_v3  ;;  %v62_v3 = vsub.f32 %v52_v32, %v58_v0 }
  0x46   :  { %456 = vmatpush.bf16.msra.mxu0 %v755_v4  ;;  %v63_v4 = vpack.c.bf16 %v59_v1, %v59_v1 }
  0x47   :  { %469 = vmatpush.bf16.msra.mxu1 %v760_v5  ;;  %v65_v5 = vpack.c.bf16 %v61_v2, %v61_v2 }
  0x48   :  { %482 = vmatpush.bf16.msra.mxu2 %v767_v6  ;;  %v66_v6 = vpack.c.bf16 %v62_v3, %v62_v3 }
  0x49   :  { %495 = vmatpush.bf16.msra.mxu3 %v772_v7 }
  0x4a   :  { %457 = vmatpush.bf16.msra.mxu0 %v779_v10 }
  0x4b   :  { %470 = vmatpush.bf16.msra.mxu1 %v784_v11 }
  0x4c   :  { %483 = vmatpush.bf16.msra.mxu2 %v791_v12 }
  0x4d   :  { %496 = vmatpush.bf16.msra.mxu3 %v796_v13 }
  0x4e   :  { %458 = vmatpush.bf16.msra.mxu0 %v803_v14 }
  0x4f   :  { %471 = vmatpush.bf16.msra.mxu1 %v808_v15 }
  0x50   :  { %484 = vmatpush.bf16.msra.mxu2 %v818_v17 }
  0x51   :  { %497 = vmatpush.bf16.msra.mxu3 %v823_v18 }
  0x52   :  { %459 = vmatpush.bf16.msra.mxu0 %v832_v21 }
  0x53   :  { %472 = vmatpush.bf16.msra.mxu1 %v837_v22 }
  0x54   :  { %485 = vmatpush.bf16.msra.mxu2 %v851_v27 }
  0x55   :  { %498 = vmatpush.bf16.msra.mxu3 %v856_v28 }
  0x56   :  { %460 = vmatpush.bf16.msra.mxu0 %v863_v29 }
  0x57   :  { %473 = vmatpush.bf16.msra.mxu1 %v868_v30 }
  0x58   :  { %486 = vmatpush.bf16.msra.mxu2 %v879_v34 }
  0x59   :  { %499 = vmatpush.bf16.msra.mxu3 %v884_v35 }
  0x5a   :  { %461 = vmatpush.bf16.msra.mxu0 %v891_v36 }
  0x5b   :  { %474 = vmatpush.bf16.msra.mxu1 %v896_v37 }
  0x5c   :  { %487 = vmatpush.bf16.msra.mxu2 %v912_v40 }
  0x5d   :  { %500 = vmatpush.bf16.msra.mxu3 %v917_v41 }
  0x5e   :  { %462 = vmatpush.bf16.msra.mxu0 %v924_v42 }
  0x5f   :  { %475 = vmatpush.bf16.msra.mxu1 %v929_v43 }
  0x60   :  { %488 = vmatpush.bf16.msra.mxu2 %v938_v46 }
  0x61   :  { %501 = vmatpush.bf16.msra.mxu3 %v943_v47  ;;  %463 = vmatmul.bf16.vlgmr.msra.gmra.mxu0 %v63_v4 }
  0x62   :  { %476 = vmatmul.bf16.vlgmr.msra.gmra.mxu1 %v713_v23 }
  0x63   :  { %489 = vmatmul.bf16.vlgmr.msra.gmra.mxu2 %v65_v5 }
  0x64   :  { %502 = vmatmul.bf16.vlgmr.msra.gmra.mxu3 %v66_v6 }
  0x9e   :  { %v346_v7 = vpop.f32.mrf.mxu0 }
  0x9f   :  { %v359_v8 = vpop.f32.mrf.mxu1 }
  0xa0   :  { %v360_v22 = vadd.f32 %v359_v8, %v346_v7 }
  0xa6   :  { %v372_v9 = vpop.f32.mrf.mxu2  ;;  %v348_v11 = vpop.f32.mrf.mxu0 }
  0xa7   :  { %v385_v10 = vpop.f32.mrf.mxu3  ;;  %v361_v12 = vpop.f32.mrf.mxu1  ;;  %v373_v23 = vadd.f32 %v372_v9, %v360_v22 }
  0xa9   :  { %v386_v25 = vadd.f32 %v385_v10, %v373_v23 }
  0xae   :  { %v374_v13 = vpop.f32.mrf.mxu2 }
  0xaf   :  { %v387_v14 = vpop.f32.mrf.mxu3 }
  0xbe   :  { %v412_v15 = vpop.f32.mrf.mxu0 }
  0xbf   :  { %v425_v16 = vpop.f32.mrf.mxu1  ;;  %v413_v26 = vadd.f32 %v412_v15, %v386_v25 }
  0xc1   :  { %v426_v29 = vadd.f32 %v425_v16, %v413_v26 }
  0xc6   :  { %v438_v17 = vpop.f32.mrf.mxu2  ;;  %v414_v19 = vpop.f32.mrf.mxu0 }
  0xc7   :  { %v451_v18 = vpop.f32.mrf.mxu3  ;;  %v427_v20 = vpop.f32.mrf.mxu1  ;;  %v439_v31 = vadd.f32 %v438_v17, %v426_v29 }
  0xc9   :  { %v452_v37 = vadd.f32 %v451_v18, %v439_v31 }
  0xce   :  { %v440_v21 = vpop.f32.mrf.mxu2 }
  0xcf   :  { %v453_v24 = vpop.f32.mrf.mxu3 }
  0xde   :  { %v464_v27 = vpop.f32.mrf.mxu0 }
  0xdf   :  { %v477_v28 = vpop.f32.mrf.mxu1 }
  0xe0   :  { %v478_v30 = vadd.f32 %v477_v28, %v464_v27 }
  0xe6   :  { %v490_v32 = vpop.f32.mrf.mxu2  ;;  %v466_v35 = vpop.f32.mrf.mxu0 }
  0xe7   :  { %v503_v33 = vpop.f32.mrf.mxu3  ;;  %v491_v34 = vadd.f32 %v490_v32, %v478_v30  ;;  %v479_v36 = vpop.f32.mrf.mxu1 }
  0xe9   :  { %v504_v38 = vadd.f32 %v503_v33, %v491_v34 }
  0xeb   :  { %v507_v39 = vadd.f32 %v504_v38, %v452_v37 }
  0xed   :  { %508 = vst [vmem:[#allocation2] sm:$0xff] %v507_v39 }
  0xee   :  { %v492_v40 = vpop.f32.mrf.mxu2  ;;  %519 = dma.vmem_to_hbm [thread:$0]  %s515_s17, 128, %s517_s20, [#allocation3]  }
  0xef   :  { %v505_v41 = vpop.f32.mrf.mxu3 }
  0xf0   :  { %711 = dma.done.wait [#allocation3], 128  }
  0xf1   :  { %712 = vsyncadd [#allocation3], 4294967168 }
  0xf2   :  { %524 = vsyncpa [#allocation3], 1 }

</bundles_post_ra>
